<compile_context>
chip_gen: v5e
topology: v5e:2x2
jax: 0.10.0
libtpu: 0.0.40
codegen_flags: <defaults>
</compile_context>

<pallas_src>
import functools
import math

import jax
import jax.numpy as jnp
from jax.experimental import pallas as pl
from jax.experimental.pallas import tpu as pltpu


def _interp_matrix(in_size: int, out_size: int) -> jnp.ndarray:
    """(out_size, in_size) linear interpolation matrix, align_corners=True."""
    if out_size == 1 or in_size == 1:
        # align_corners=True with a single output (or input) sample -> index 0
        m = jnp.zeros((out_size, in_size), jnp.float32)
        return m.at[:, 0].set(1.0)
    src = jnp.arange(out_size, dtype=jnp.float32) * (in_size - 1) / (out_size - 1)
    i0 = jnp.clip(jnp.floor(src).astype(jnp.int32), 0, in_size - 2)
    frac = src - i0.astype(jnp.float32)
    low = jax.nn.one_hot(i0, in_size, dtype=jnp.float32) * (1.0 - frac)[:, None]
    high = jax.nn.one_hot(i0 + 1, in_size, dtype=jnp.float32) * frac[:, None]
    return low + high


def _vmem_capacity_bytes() -> int:
    """Physical VMEM of the local chip; conservative fallback (v7x) if unknown."""
    try:
        return int(pltpu.get_tpu_info().vmem_capacity_bytes)
    except Exception:
        return 64 << 20


def _block_vmem_bytes(b, H, W, Ho, Wo, in_item, out_item, w_first):
    """VMEM footprint of one grid step with b planes per block."""
    io = 2 * b * (H * W * in_item + Ho * Wo * out_item)       # double-buffered x / out blocks
    consts = 2 * (Ho * H + W * Wo) * in_item                  # interp matrices (2 pipeline buffers)
    inter = ((H * Wo) if w_first else (Ho * W)) * 4 + Ho * Wo * 4   # per-plane f32 temporaries
    return io + consts + inter


def _choose_block_planes(P, H, W, Ho, Wo, in_item, out_item, w_first,
                         vmem_budget_bytes, target_steps=4):
    """Planes per grid step: as large as VMEM allows, but keep >= target_steps
    grid steps when P permits (v7x: >= 2 steps per TensorCore) and avoid a
    mostly-padding tail block."""
    per_plane = 2 * (H * W * in_item + Ho * Wo * out_item)
    fixed = _block_vmem_bytes(0, H, W, Ho, Wo, in_item, out_item, w_first)
    b_cap = max(1, (vmem_budget_bytes - fixed) // max(1, per_plane))
    b_target = -(-P // target_steps)                          # ceil(P / target_steps)
    return int(max(1, min(b_cap, b_target, P)))


def _resize_kernel(x_ref, ah_ref, awt_ref, o_ref, *, w_first, block_planes):
    # x_ref:   (B, H, W)    B image planes
    # ah_ref:  (Ho, H)      row-interpolation matrix with `factor` folded in
    # awt_ref: (W, Wo)      column-interpolation matrix, pre-transposed
    # o_ref:   (B, Ho, Wo)
    ah = ah_ref[...]
    awt = awt_ref[...]
    cdt = x_ref.dtype

    def one_plane(b):
        xb = x_ref[b]                                                    # (H, W)
        if w_first:   # contract W first when that is the cheaper order
            t = jnp.dot(xb, awt, preferred_element_type=jnp.float32)     # (H, Wo)
            out = jnp.dot(ah, t.astype(cdt),
                          preferred_element_type=jnp.float32)            # (Ho, Wo)
        else:         # contract H first
            t = jnp.dot(ah, xb, preferred_element_type=jnp.float32)      # (Ho, W)
            out = jnp.dot(t.astype(cdt), awt,
                          preferred_element_type=jnp.float32)            # (Ho, Wo)
        o_ref[b] = out.astype(o_ref.dtype)

    if block_planes <= 8:
        for b in range(block_planes):       # short fixed loop: full LLO visibility
            one_plane(b)
    else:
        @pl.loop(0, block_planes)
        def _(b):
            one_plane(b)


def resize_transform(x: jnp.ndarray, factor=None) -> jnp.ndarray:
    """Pallas implementation of ResizeTransform.forward for 2-D inputs (NCHW)."""
    if factor is None:
        factor = 1
    factor = float(factor)
    if factor == 1.0:
        return x

    N, C, H, W = x.shape
    # PyTorch F.interpolate with scale_factor: out_size = floor(in_size * factor)
    Ho = int(math.floor(H * factor))
    Wo = int(math.floor(W * factor))
    P = N * C

    cdt = x.dtype
    in_item = jnp.dtype(cdt).itemsize
    out_item = in_item

    # Cheaper contraction order by exact MAC count.
    w_first = (H * Wo * (W + Ho)) <= (Ho * W * (H + Wo))

    # --- per-generation sizing ------------------------------------------------
    vmem_cap = _vmem_capacity_bytes()                 # 64 MiB v7x / 128 MiB v5e,v6e
    budget = int(vmem_cap * 0.6)                      # headroom for Mosaic internals
    B = _choose_block_planes(P, H, W, Ho, Wo, in_item, out_item, w_first, budget)
    G = -(-P // B)
    P_pad = G * B
    need = _block_vmem_bytes(B, H, W, Ho, Wo, in_item, out_item, w_first)
    vmem_limit = int(min(vmem_cap, max(32 << 20, need + (8 << 20))))

    # --- build the (tiny) interpolation operands at trace time ------------------
    a_h = (_interp_matrix(H, Ho) * jnp.float32(factor)).astype(cdt)   # (Ho, H)
    a_w_t = _interp_matrix(W, Wo).T.astype(cdt)                       # (W, Wo)

    x3 = x.reshape(P, H, W)
    if P_pad != P:
        x3 = jnp.pad(x3, ((0, P_pad - P), (0, 0), (0, 0)))

    kernel = functools.partial(_resize_kernel, w_first=w_first, block_planes=B)

    out3 = pl.pallas_call(
        kernel,
        out_shape=jax.ShapeDtypeStruct((P_pad, Ho, Wo), x.dtype),
        grid_spec=pltpu.PrefetchScalarGridSpec(
            num_scalar_prefetch=0,
            grid=(G,),
            in_specs=[
                pl.BlockSpec((B, H, W), lambda i: (i, 0, 0)),   # B planes of x
                pl.BlockSpec((Ho, H), lambda i: (0, 0)),        # constant, fetched once
                pl.BlockSpec((W, Wo), lambda i: (0, 0)),        # constant, fetched once
            ],
            out_specs=pl.BlockSpec((B, Ho, Wo), lambda i: (i, 0, 0)),
        ),
        compiler_params=pltpu.CompilerParams(
            dimension_semantics=("parallel",),
            vmem_limit_bytes=vmem_limit,
        ),
    )(x3, a_h, a_w_t)

    return out3[:P].reshape(N, C, Ho, Wo)


def _reference(x, factor):
    """Pure-JAX reference (same math, no Pallas) for verification."""
    N, C, H, W = x.shape
    Ho = int(math.floor(H * float(factor)))
    Wo = int(math.floor(W * float(factor)))
    a_h = _interp_matrix(H, Ho)
    a_w = _interp_matrix(W, Wo)
    y = jnp.einsum('oh,nchw,vw->ncov', a_h, x.astype(jnp.float32), a_w)
    return (jnp.float32(factor) * y).astype(x.dtype)


if __name__ == "__main__":
    key = jax.random.PRNGKey(0)
    # dimension=2 -> bilinear; small NCHW input like a 2-D flow field.
    x = jax.random.normal(key, (2, 4, 16, 16), dtype=jnp.float32)

    # factor > 1 branch: scale then upsample (16 -> 32)
    y_up = resize_transform(x, 2.0)
    jax.block_until_ready(y_up)
    assert y_up.shape == (2, 4, 32, 32)
    assert jnp.allclose(y_up, _reference(x, 2.0), atol=1e-3, rtol=1e-3)

    # factor < 1 branch: downsample then scale (16 -> 8)
    y_dn = resize_transform(x, 0.5)
    jax.block_until_ready(y_dn)
    assert y_dn.shape == (2, 4, 8, 8)
    assert jnp.allclose(y_dn, _reference(x, 0.5), atol=1e-3, rtol=1e-3)

    # factor == 1 branch: identity
    y_id = resize_transform(x, 1)
    jax.block_until_ready(y_id)
    assert y_id.shape == x.shape

    # Odd plane count + H not a multiple of 8: exercises padding / full-extent blocks.
    x2 = jax.random.normal(jax.random.PRNGKey(1), (1, 3, 12, 20), dtype=jnp.float32)
    y2 = resize_transform(x2, 2.0)
    jax.block_until_ready(y2)
    assert y2.shape == (1, 3, 24, 40)
    assert jnp.allclose(y2, _reference(x2, 2.0), atol=1e-3, rtol=1e-3)

    # Many small planes: B > 8 so the in-kernel pl.loop path is exercised.
    x3 = jax.random.normal(jax.random.PRNGKey(2), (4, 16, 8, 8), dtype=jnp.float32)
    y3 = resize_transform(x3, 2.0)
    jax.block_until_ready(y3)
    assert y3.shape == (4, 16, 16, 16)
    assert jnp.allclose(y3, _reference(x3, 2.0), atol=1e-3, rtol=1e-3)

    # bf16 smoke test (bf16 MXU operands, f32 accumulation) with loose tolerance.
    xb = x.astype(jnp.bfloat16)
    yb = resize_transform(xb, 2.0)
    jax.block_until_ready(yb)
    assert yb.dtype == jnp.bfloat16 and yb.shape == (2, 4, 32, 32)
    assert jnp.allclose(yb.astype(jnp.float32),
                        _reference(xb.astype(jnp.float32), 2.0),
                        atol=0.15, rtol=0.05)

    print("KERNEL_OK")
</pallas_src>

<mosaic_0001>
module attributes {stable_mosaic.version = 11 : i64} {
  func.func @_resize_kernel(%arg0: i32, %arg1: memref<2x16x16xf32, #tpu.memory_space<vmem>>, %arg2: memref<32x16xf32, #tpu.memory_space<vmem>>, %arg3: memref<16x32xf32, #tpu.memory_space<vmem>>, %arg4: memref<2x32x32xf32, #tpu.memory_space<vmem>>) attributes {dimension_semantics = [#tpu.dimension_semantics<parallel>], iteration_bounds = array<i64: 4>, scalar_prefetch = 0 : i64, scratch_operands = 0 : i64, tpu.core_type = #tpu.core_type<tc>, window_params = [{transform_indices = @transform_0, window_bounds = array<i64: 2, 16, 16>}, {pipeline_mode = #tpu.pipeline_mode<synchronous>, transform_indices = @transform_1, window_bounds = array<i64: 32, 16>}, {pipeline_mode = #tpu.pipeline_mode<synchronous>, transform_indices = @transform_2, window_bounds = array<i64: 16, 32>}, {transform_indices = @transform_3, window_bounds = array<i64: 2, 32, 32>}]} {
    %c0 = arith.constant 0 : index
    %c0_0 = arith.constant 0 : index
    %0 = vector.load %arg2[%c0, %c0_0] : memref<32x16xf32, #tpu.memory_space<vmem>>, vector<32x16xf32>
    %c0_1 = arith.constant 0 : index
    %c0_2 = arith.constant 0 : index
    %1 = vector.load %arg3[%c0_1, %c0_2] : memref<16x32xf32, #tpu.memory_space<vmem>>, vector<16x32xf32>
    %c0_3 = arith.constant 0 : index
    %c0_4 = arith.constant 0 : index
    %c0_5 = arith.constant 0 : index
    %2 = vector.load %arg1[%c0_3, %c0_4, %c0_5] : memref<2x16x16xf32, #tpu.memory_space<vmem>>, vector<1x16x16xf32>
    %3 = vector.shape_cast %2 : vector<1x16x16xf32> to vector<16x16xf32>
    %cst = arith.constant dense<0.000000e+00> : vector<16x32xf32>
    %4 = tpu.matmul %3, %1, %cst {dimension_numbers = #tpu.dot_dimension_numbers<[1], [0], [0], [1], [0, 0, 1, 1], [], []>} : vector<16x16xf32>, vector<16x32xf32>, vector<16x32xf32> -> vector<16x32xf32>
    %cst_6 = arith.constant dense<0.000000e+00> : vector<32x32xf32>
    %5 = tpu.matmul %0, %4, %cst_6 {dimension_numbers = #tpu.dot_dimension_numbers<[1], [0], [0], [1], [0, 0, 1, 1], [], []>} : vector<32x16xf32>, vector<16x32xf32>, vector<32x32xf32> -> vector<32x32xf32>
    %c0_7 = arith.constant 0 : index
    %c0_8 = arith.constant 0 : index
    %c0_9 = arith.constant 0 : index
    %6 = vector.load %arg4[%c0_7, %c0_8, %c0_9] : memref<2x32x32xf32, #tpu.memory_space<vmem>>, vector<1x32x32xf32>
    %7 = vector.shape_cast %6 : vector<1x32x32xf32> to vector<32x32xf32>
    %8 = vector.shape_cast %5 : vector<32x32xf32> to vector<1x32x32xf32>
    tpu.vector_store %arg4[%c0_7, %c0_8, %c0_9], %8 {strides = array<i32>} : memref<2x32x32xf32, #tpu.memory_space<vmem>>, vector<1x32x32xf32>,
    %c1 = arith.constant 1 : index
    %c0_10 = arith.constant 0 : index
    %c0_11 = arith.constant 0 : index
    %9 = vector.load %arg1[%c1, %c0_10, %c0_11] : memref<2x16x16xf32, #tpu.memory_space<vmem>>, vector<1x16x16xf32>
    %10 = vector.shape_cast %9 : vector<1x16x16xf32> to vector<16x16xf32>
    %cst_12 = arith.constant dense<0.000000e+00> : vector<16x32xf32>
    %11 = tpu.matmul %10, %1, %cst_12 {dimension_numbers = #tpu.dot_dimension_numbers<[1], [0], [0], [1], [0, 0, 1, 1], [], []>} : vector<16x16xf32>, vector<16x32xf32>, vector<16x32xf32> -> vector<16x32xf32>
    %cst_13 = arith.constant dense<0.000000e+00> : vector<32x32xf32>
    %12 = tpu.matmul %0, %11, %cst_13 {dimension_numbers = #tpu.dot_dimension_numbers<[1], [0], [0], [1], [0, 0, 1, 1], [], []>} : vector<32x16xf32>, vector<16x32xf32>, vector<32x32xf32> -> vector<32x32xf32>
    %c1_14 = arith.constant 1 : index
    %c0_15 = arith.constant 0 : index
    %c0_16 = arith.constant 0 : index
    %13 = vector.load %arg4[%c1_14, %c0_15, %c0_16] : memref<2x32x32xf32, #tpu.memory_space<vmem>>, vector<1x32x32xf32>
    %14 = vector.shape_cast %13 : vector<1x32x32xf32> to vector<32x32xf32>
    %15 = vector.shape_cast %12 : vector<32x32xf32> to vector<1x32x32xf32>
    tpu.vector_store %arg4[%c1_14, %c0_15, %c0_16], %15 {strides = array<i32>} : memref<2x32x32xf32, #tpu.memory_space<vmem>>, vector<1x32x32xf32>,
    return
  }
  func.func @transform_0(%arg0: i32) -> (i32, i32, i32) {
    %c0_i32 = arith.constant 0 : i32
    %c0_i32_0 = arith.constant 0 : i32
    %c0_i32_1 = arith.constant 0 : i32
    return %arg0, %c0_i32, %c0_i32_0 : i32, i32, i32
  }
  func.func @transform_1(%arg0: i32) -> (i32, i32) {
    %c0_i32 = arith.constant 0 : i32
    %c0_i32_0 = arith.constant 0 : i32
    %c0_i32_1 = arith.constant 0 : i32
    return %c0_i32, %c0_i32_0 : i32, i32
  }
  func.func @transform_2(%arg0: i32) -> (i32, i32) {
    %c0_i32 = arith.constant 0 : i32
    %c0_i32_0 = arith.constant 0 : i32
    %c0_i32_1 = arith.constant 0 : i32
    return %c0_i32, %c0_i32_0 : i32, i32
  }
  func.func @transform_3(%arg0: i32) -> (i32, i32, i32) {
    %c0_i32 = arith.constant 0 : i32
    %c0_i32_0 = arith.constant 0 : i32
    %c0_i32_1 = arith.constant 0 : i32
    return %arg0, %c0_i32, %c0_i32_0 : i32, i32, i32
  }
}

</mosaic_0001>

<bundles_post_ra>
// kernel: tpu_custom_call.1
= control target key start
LH: loop header
LB: loop body
LE: loop exit
PB: predicated region body
PF: predicated region fallthrough
CT: control target
= control target key end

     0   :  { %8 = vsyncpa [#allocation3], 0  ;;  %s812_s0 = inlined_call_operand.hbm [shape: f32[8,16,16], index: 0, kind: input, shape index: {}]   ;;  %s813_s1 = inlined_call_operand.vmem [shape: f32[32,16], index: 1, kind: input, shape index: {}]   ;;  %s814_s2 = inlined_call_operand.vmem [shape: f32[16,32], index: 2, kind: input, shape index: {}]   ;;  %s815_s3 = inlined_call_operand.hbm [shape: f32[8,32,32], index: 3, kind: output, shape index: {}]  }
   0x1   :  { %10 = vsyncpa [#allocation3 + $0x1], 0 }
   0x2   :  { %11 = vsyncpa [#allocation4], 0 }
   0x3   :  { %13 = vsyncpa [#allocation4 + $0x1], 0  ;;  %s648_s12 = smov 0   ;;  %s650_s13 = smov 0  }
   0x4   :  { %s652_s14 = smov 0   ;;  %s654_s15 = smov 0  }
   0x5 LB: > { %s669_s16 = sadd.s32 4294967295, %s622_s15   ;;  %s434_s17 = sadd.s32 4294967294, %s622_s15   ;;  %s622_s15 = sphi %s654_s15, %s824_s15   ;;  %s618_s14 = sphi %s652_s14, %s823_s14   ;;  %s614_s13 = sphi %s650_s13, %s822_s13   ;;  %s610_s12 = sphi %s648_s12, %s821_s12  }
   0x6   : > { %s673_s18 = sadd.s32 1, %s622_s15   ;;  %s26_s19 = sadd.s32 1, %s618_s14 }
   0x7   : > { %s23_s20 = ssub.s32 %s622_s15, %s673_s18  ;;  %p33_p0 = scmp.ne.s32.totalorder %s618_s14, %s614_s13 }
   0x8   : > { %p24_p1 = scmp.eq.s32.totalorder %s23_s20, 0  ;;  %p34_p2 = scmp.eq.s32.totalorder %s622_s15, 0 }
   0x9   : > { %p39_p3 = scmp.ne.s32.totalorder %s614_s13, %s610_s12  ;;  %p40_p4 = scmp.eq.s32.totalorder %s669_s16, 0 }
   0xa   : > { %s685_s21 = scalar_select %p24_p1, %s618_s14, %s26_s19  }
   0xb   : > { %p687_p5 = por %p34_p2, %p33_p0  ;;  %p691_p6 = por %p40_p4, %p39_p3 }
   0xc   : > { %p105_p7 = scmp.eq.s32.totalorder %s669_s16, 3  ;;  %p111_p8 = scmp.eq.s32.totalorder %s434_s17, 3 }
   0xd   : > { %p488_p9 = scmp.lt.s32.totalorder %s622_s15, 4  ;;  %s137_s26 = sand.u32 1, %s618_s14  }
   0xe   : > { %p697_p10 = por %p105_p7, %p33_p0  ;;  %p701_p11 = por %p111_p8, %p39_p3 }
   0xf   : > { %s469_s27 = sshll.u32 %s622_s15, 5  ;;  %s437_s28 = sshll.u32 %s137_s26, 5 }
  0x10   : > { %s147_s4 = scalar_lea.hbm %s812_s0, %s469_s27  ;;  %s141_s6 = scalar_lea.vmem [#allocation2], %s437_s28 }
  0x11   : > { %s148_s5 = sshll.u32 %s147_s4, 4  ;;  %s150_s7 = sshll.u32 %s141_s6, 4  ;;  %s149_s5 = int_to_ptr.hbm [resolvable:$true] %s148_s5  ;;  %s151_s7 = int_to_ptr.vmem [resolvable:$true] %s150_s7 }
  0x12   : > { %p712_p12 = pnand %p488_p9, %p687_p5  ;;  %p441_p13 = scmp.ge.s32.totalorder %s622_s15, 1 }
  0x13   : > { %p158_p0 = scmp.lt.s32.totalorder %s622_s15, 5  ;;  %s138_s9 = scalar_lea.sflag [#allocation3], %s137_s26 }
  0x14   : > { %s526_s10 = sshra.s32 %s149_s5, 4  ;;  %p530_p2 = pneg %p712_p12  ;;  %s527_s10 = int_to_ptr.hbm [resolvable:$true] %s526_s10 }
  0x15   : > { %s528_s11 = scalar_lea.hbm %s527_s10, 32  ;;  %s533_s20 = scalar_lea.hbm %s812_s0, 128 }
  0x16   : > { %p529_p1 = scmp.ne.s32.totalorder %s527_s10, %s528_s11  ;;  %p534_p5 = scmp.lt.s32.totalorder %s527_s10, %s812_s0 }
  0x17   : > { %p535_p7 = scmp.lt.s32.totalorder %s533_s20, %s528_s11 }
  0x18   : > { %p531_p3 = pnand %p530_p2, %p529_p1 }
  0x19   : > { %p536_p8 = por %p535_p7, %p534_p5 }
  0x1a   : > { %p532_p4 = pneg %p531_p3 }
  0x1c   : > { %p537_p9 = pnand %p536_p8, %p532_p4 }
  0x1e   : > { %540 = shalt.err (!%p537_p9)
}
  0x1f   : > { %s624_s26 = smov 128   ;;  %s625_s28 = smov 8  }
  0x20   : > { %483 = dma.hbm_to_vmem [thread:$0]  (!%p712_p12), %s149_s5, 512, %s151_s7, %s138_s9, %s624_s26, %s624_s26, %s625_s28  }
  0x21   : > { %p159_p1 = pnand %p441_p13, %p158_p0 }
  0x22   : > { %s733_s29 = sand.u32 (!%p159_p1), 1, %s614_s13  }
  0x23   : > { %162 = sbr.rel (%p159_p1) target bundleno = 340 (0x154), region = 32  ;;  %s442_s30 = sshll.u32 (!%p159_p1), %s733_s29, 5 }
  0x24   : > { %s165_s4 = scalar_lea.sflag (!%p159_p1), [#allocation3], %s733_s29  ;;  %s168_s6 = scalar_lea.vmem (!%p159_p1), [#allocation2], %s442_s30 }
  0x28   : > { %601 = dma.done.wait (%p691_p6), %s165_s4, 512  }
  0x29   : > { %603 = vsyncadd (%p691_p6), %s165_s4, 4294966784  ;;  %v199_v0 = vld [vmem:[%s814_s2 + $0x8] sm:$0xff]  ;;  %v198_v1 = vld [vmem:[%s814_s2] sm:$0xff]  ;;  %vm202_vm0 = vcmask 130048   ;;  %s443_s26 = sshll.u32 %s733_s29, 6  ;;  %vm273_vm1 = vcmask 261120  }
  0x2a   : > { %301 = vmatpush.msra.mxu2 %v199_v0  ;;  %223 = vmatpush.msra.mxu0 %v199_v0  ;;  %v450_v2 = vld [vmem:[%s168_s6 + $0x10] sm:$0xff]  ;;  %v200_v3 = vld [vmem:[%s168_s6] sm:$0xff]  ;;  %v451_v4 = vld [vmem:[%s168_s6 + $0x18] sm:$0xff]  ;;  %s191_s28 = scalar_lea.vmem [#allocation5], %s443_s26  ;;  %s471_s30 = sshll.u32 %s669_s16, 6 }
  0x2b   : > { %v201_v5 = vld [vmem:[%s168_s6 + $0x8] sm:$0xff]  ;;  %v194_v10 = vld [vmem:[%s813_s1] sm:$0xff]  ;;  %v196_v12 = vld [vmem:[%s813_s1 + $0x10] sm:$0xff]  ;;  %s357_s8 = scalar_lea.hbm %s815_s3, %s471_s30  ;;  %s358_s5 = sshll.u32 %s191_s28, 4  ;;  %s359_s5 = int_to_ptr.vmem [resolvable:$true] %s358_s5 }
  0x2c   : > { %302 = vmatpush.msra.mxu2 %v198_v1  ;;  %224 = vmatpush.msra.mxu0 %v198_v1  ;;  %v195_v9 = vld [vmem:[%s813_s1 + $0x8] sm:$0xff]  ;;  %v197_v13 = vld [vmem:[%s813_s1 + $0x18] sm:$0xff]  ;;  %s360_s7 = sshll.u32 %s357_s8, 4  ;;  %s345_s9 = scalar_lea.sflag [#allocation4], %s733_s29  ;;  %s361_s7 = int_to_ptr.hbm [resolvable:$true] %s360_s7 }
  0x2d   : > { %452 = vmatmul.msk.f32.vlgmr.msra.gmra.mxu2 %vm202_vm0, %v450_v2  ;;  %444 = vmatmul.msk.f32.vlgmr.msra.gmra.mxu0 %vm202_vm0, %v200_v3  ;;  %s570_s23 = sshra.s32 %s361_s7, 4  ;;  %s576_s17 = scalar_lea.hbm %s815_s3, 256  ;;  %s571_s23 = int_to_ptr.hbm [resolvable:$true] %s570_s23 }
  0x2e   : > { %s572_s10 = scalar_lea.hbm %s571_s23, 64  ;;  %p577_p0 = scmp.lt.s32.totalorder %s571_s23, %s815_s3 }
  0x2f   : > { %p573_p6 = scmp.ne.s32.totalorder %s571_s23, %s572_s10  ;;  %p578_p2 = scmp.lt.s32.totalorder %s576_s17, %s572_s10 }
  0x31   : > { %p574_p12 = pnand %p573_p6, %p697_p10  ;;  %p579_p3 = por %p578_p2, %p577_p0 }
  0x33   : > { %p575_p13 = pneg %p574_p12 }
  0x35   : > { %453 = vmatmul.msk.f32.gmra.mxu2 %vm202_vm0, %v451_v4  ;;  %445 = vmatmul.msk.f32.gmra.mxu0 %vm202_vm0, %v201_v5  ;;  %p580_p4 = pnand %p579_p3, %p575_p13 }
  0xaa   : > { %v226_v6 = vpop.f32.mrf.mxu0 }
  0xb0   : > { %v304_v7 = vpop.f32.mrf.mxu2 }
  0xb2   : > { %v229_v8 = vpop.f32.mrf.mxu0 }
  0xb3   : > { %258 = vmatpush.msrb.mxu0 %v229_v8  ;;  %472 = vmatpush.msra.mxu1 %v229_v8 }
  0xb5   : > { %259 = vmatpush.msrb.mxu0 %v226_v6  ;;  %473 = vmatpush.msra.mxu1 %v226_v6 }
  0xb6   : > { %447 = vmatmul.msk.f32.vlgmr.msra.gmra.mxu1 %vm202_vm0, %v195_v9  ;;  %446 = vmatmul.msk.f32.vlgmr.msrb.gmra.mxu0 %vm202_vm0, %v194_v10 }
  0xb8   : > { %v307_v11 = vpop.f32.mrf.mxu2 }
  0xb9   : > { %324 = vmatpush.msrb.mxu2 %v307_v11  ;;  %474 = vmatpush.msra.mxu3 %v307_v11 }
  0xbb   : > { %325 = vmatpush.msrb.mxu2 %v304_v7  ;;  %475 = vmatpush.msra.mxu3 %v304_v7 }
  0xbc   : > { %455 = vmatmul.msk.f32.vlgmr.msra.gmra.mxu3 %vm202_vm0, %v195_v9  ;;  %454 = vmatmul.msk.f32.vlgmr.msrb.gmra.mxu2 %vm202_vm0, %v194_v10 }
  0xbe   : > { %448 = vmatmul.msk.f32.gmra.mxu1 %vm202_vm0, %v196_v12 }
  0xc4   : > { %456 = vmatmul.msk.f32.gmra.mxu3 %vm202_vm0, %v196_v12 }
  0xc6   : > { %449 = vmatmul.msk.f32.gmra.mxu1 %vm202_vm0, %v197_v13 }
  0xcc   : > { %457 = vmatmul.msk.f32.gmra.mxu3 %vm202_vm0, %v197_v13 }
 0x133   : > { %v264_v14 = vpop.f32.mrf.mxu1  ;;  %v261_v15 = vpop.f32.mrf.mxu0 }
 0x134   : > { %275 = vst.msk [vmem:[%s191_s28 + $0x8] sm:$0xff] %vm273_vm1, %v264_v14 }
 0x135   : > { %274 = vst.msk [vmem:[%s191_s28] sm:$0xff] %vm273_vm1, %v261_v15 }
 0x13b   : > { %v267_v16 = vpop.f32.mrf.mxu1 }
 0x13c   : > { %276 = vst.msk [vmem:[%s191_s28 + $0x10] sm:$0xff] %vm273_vm1, %v267_v16 }
 0x13f   : > { %v330_v17 = vpop.f32.mrf.mxu3  ;;  %v327_v18 = vpop.f32.mrf.mxu2 }
 0x140   : > { %459 = vst.msk [vmem:[%s191_s28 + $0x28] sm:$0xff] %vm273_vm1, %v330_v17 }
 0x141   : > { %458 = vst.msk [vmem:[%s191_s28 + $0x20] sm:$0xff] %vm273_vm1, %v327_v18 }
 0x143   : > { %v270_v19 = vpop.f32.mrf.mxu1 }
 0x144   : > { %277 = vst.msk [vmem:[%s191_s28 + $0x18] sm:$0xff] %vm273_vm1, %v270_v19 }
 0x147   : > { %v333_v20 = vpop.f32.mrf.mxu3 }
 0x148   : > { %460 = vst.msk [vmem:[%s191_s28 + $0x30] sm:$0xff] %vm273_vm1, %v333_v20 }
 0x14f   : > { %v336_v21 = vpop.f32.mrf.mxu3 }
 0x150   : > { %461 = vst.msk [vmem:[%s191_s28 + $0x38] sm:$0xff] %vm273_vm1, %v336_v21 }
 0x151   : > { %583 = shalt.err (!%p580_p4)
}
 0x152   : > { %s626_s29 = smov 128   ;;  %s627_s22 = smov 8  }
 0x153   : > { %478 = dma.vmem_to_hbm [thread:$0]  (%p697_p10), %s359_s5, 1024, %s361_s7, %s345_s9, %s626_s29, %s626_s29, %s627_s22  }
 0x154 PF: > { %p489_p5 = scmp.ge.s32.totalorder %s622_s15, 2  ;;  %s375_s27 = sand.u32 1, %s610_s12  }
 0x155   : > { %s376_s26 = scalar_lea.sflag [#allocation4], %s375_s27 }
 0x156   : > { %p485_p7 = pnand %p489_p5, %p701_p11 }
 0x158   : > { %p486_p8 = pneg %p485_p7 }
 0x15a   : > { %605 = dma.done.wait (%p486_p8), %s376_s26, 1024  }
 0x15b   : > { %607 = vsyncadd (%p486_p8), %s376_s26, 4294966272  ;;  %p16_p9 = scmp.ge.s32.totalorder %s673_s18, 6   ;;  %s821_s12 = smov %s614_s13 }
 0x15c   : > { %s822_s13 = smov %s618_s14  ;;  %s823_s14 = smov %s685_s21 }
 0x15d   : > { %s824_s15 = smov %s673_s18  ;;  %18 = sbr.rel (!%p16_p9) target bundleno = 5 (0x5), region = 79 }
 0x162   :  { %382 = vsyncpa [#allocation3], 1 }
 0x163   :  { %384 = vsyncpa [#allocation3 + $0x1], 1 }
 0x164   :  { %385 = vsyncpa [#allocation4], 1 }
 0x165   :  { %387 = vsyncpa [#allocation4 + $0x1], 1 }

</bundles_post_ra>
